<compile_context>
chip_gen: v6e
topology: v6e:2x2x1
jax: 0.10.0
libtpu: 0.0.40
codegen_flags: <defaults>
</compile_context>

<pallas_src>
import jax
import jax.numpy as jnp
from jax.experimental import pallas as pl
from jax.experimental.pallas import tpu as pltpu


# ---------------------------------------------------------------------------
# Parameter packing (one-time, at load): bias-augmented MXU operands.
#   A1 (11, 2):  rows 0..9 = W1, row 10 = 0
#   c1 (11, 1):  rows 0..9 = b1, row 10 = 1.0   (creates the "ones" carry row)
#   A2 (11, 11): rows 0..9 = [W2 | b2], row 10 = e_10 (passes the ones row on)
#   A3 (8, 11):  row 0     = [W3 | b3], rows 1..7 = 0 (sublane padding)
# ---------------------------------------------------------------------------
def pack_params(params):
    f32 = jnp.float32
    w1 = params["w1"].astype(f32)   # (10, 2)
    b1 = params["b1"].astype(f32)   # (10,)
    w2 = params["w2"].astype(f32)   # (10, 10)
    b2 = params["b2"].astype(f32)   # (10,)
    w3 = params["w3"].astype(f32)   # (1, 10)
    b3 = params["b3"].astype(f32)   # (1,)

    a1 = jnp.zeros((11, 2), f32).at[0:10, :].set(w1)
    c1 = jnp.zeros((11, 1), f32).at[0:10, 0].set(b1).at[10, 0].set(1.0)
    a2 = (jnp.zeros((11, 11), f32)
          .at[0:10, 0:10].set(w2)
          .at[0:10, 10].set(b2)
          .at[10, 10].set(1.0))
    a3 = (jnp.zeros((8, 11), f32)
          .at[0, 0:10].set(w3[0])
          .at[0, 10].set(b3[0]))
    return {"a1": a1, "c1": c1, "a2": a2, "a3": a3}


def _mlp_kernel(x_ref, a1_ref, c1_ref, a2_ref, a3_ref, o_ref):
    hp = jax.lax.Precision.HIGHEST
    x = x_ref[...]                                        # (2, tm) lane-dense

    # Layer 1 on the MXU (K=2).  c1 = [b1; 1]: adding it both applies the
    # layer-1 bias and creates the "ones" row (row 10) that carries the
    # layer-2 / layer-3 biases through their matmuls for free.
    h1 = jnp.dot(a1_ref[...], x,
                 preferred_element_type=jnp.float32, precision=hp)   # (11, tm)
    h1 = jnp.maximum(h1 + c1_ref[...], 0.0)               # row 10 == relu(1) == 1

    # Layer 2 (+ bias via the ones row), MXU.
    h2 = jnp.dot(a2_ref[...], h1,
                 preferred_element_type=jnp.float32, precision=hp)   # (11, tm)
    h2 = jnp.maximum(h2, 0.0)                             # row 10 stays 1

    # Layer 3 (+ bias via the ones row), MXU.  Rows 1..7 of A3 are zero pad.
    out = jnp.dot(a3_ref[...], h2,
                  preferred_element_type=jnp.float32, precision=hp)  # (8, tm)
    o_ref[...] = out[0:1, :].astype(o_ref.dtype)


# ---------------------------------------------------------------------------
# Grid / tile heuristic.
#   Per step the kernel moves only 12*tm bytes of HBM, so tiles are sized to
#   amortize the ~0.35us fixed per-step cost:
#     - one step for <=16K lanes (v5e/v6e latency regime),
#     - otherwise cap at 32K lanes/step (~10 MB VMEM incl. sublane padding and
#       double buffering -> fits v5e's 16 MiB scoped default and v7x's 64 MiB
#       physical), with an even step count so v7x's 2 TensorCores balance.
# ---------------------------------------------------------------------------
_SINGLE_STEP_LANES = 16384
_TM_LANES_CAP = 32768


def _choose_grid(n):
    cols = max(1, pl.cdiv(n, 128))          # 128-lane column groups
    lanes = cols * 128
    if lanes <= _SINGLE_STEP_LANES:
        return lanes, 1
    n_blocks = pl.cdiv(cols, _TM_LANES_CAP // 128)
    if n_blocks % 2:
        n_blocks += 1                        # even step count for 2-TC chips
    tm_cols = pl.cdiv(cols, n_blocks)
    return tm_cols * 128, pl.cdiv(cols, tm_cols)


def modelo_circulo_2_t(x_t, packed):
    """Forward pass on a features-major input x_t of shape (2, N) -> (1, N)."""
    in_f, n = x_t.shape
    assert in_f == 2

    tm, n_blocks = _choose_grid(n)
    lanes = tm * n_blocks
    if lanes != n:
        # Tiny lane pad only for ragged N (no unconditional full-pass pad).
        x_t = jnp.pad(x_t, ((0, 0), (0, lanes - n)))

    out = pl.pallas_call(
        _mlp_kernel,
        out_shape=jax.ShapeDtypeStruct((1, lanes), x_t.dtype),
        grid_spec=pltpu.PrefetchScalarGridSpec(
            num_scalar_prefetch=0,
            grid=(n_blocks,),
            in_specs=[
                pl.BlockSpec((2, tm), lambda i: (0, i)),    # x tile, lane-dense
                pl.BlockSpec((11, 2), lambda i: (0, 0)),    # A1  (resident)
                pl.BlockSpec((11, 1), lambda i: (0, 0)),    # c1  (resident)
                pl.BlockSpec((11, 11), lambda i: (0, 0)),   # A2  (resident)
                pl.BlockSpec((8, 11), lambda i: (0, 0)),    # A3  (resident)
            ],
            out_specs=pl.BlockSpec((1, tm), lambda i: (0, i)),
        ),
        compiler_params=pltpu.CompilerParams(
            dimension_semantics=("parallel",),
            vmem_limit_bytes=32 * 1024 * 1024,
        ),
    )(x_t, packed["a1"], packed["c1"], packed["a2"], packed["a3"])

    return out[:, :n]                                       # (1, N)


def modelo_circulo_2(x, packed):
    """Compatibility entry matching PyTorch convention: x (N, 2) -> (N, 1).

    Prefer modelo_circulo_2_t (features-major (2, N)) in production: it avoids
    the extra transpose pass over x that this wrapper performs.
    """
    return modelo_circulo_2_t(x.T, packed).T


# ---------------------------------------------------------------------------
# Reference / init helpers (pure JAX, for the sanity check).
# ---------------------------------------------------------------------------
def init_params(key):
    """Deterministic init mimicking nn.Linear defaults: U(-1/sqrt(fan_in), +)."""
    def linear(key, out_f, in_f):
        kw, kb = jax.random.split(key)
        bound = 1.0 / jnp.sqrt(in_f)
        w = jax.random.uniform(kw, (out_f, in_f), jnp.float32, -bound, bound)
        b = jax.random.uniform(kb, (out_f,), jnp.float32, -bound, bound)
        return w, b

    k1, k2, k3 = jax.random.split(key, 3)
    w1, b1 = linear(k1, 10, 2)
    w2, b2 = linear(k2, 10, 10)
    w3, b3 = linear(k3, 1, 10)
    return {"w1": w1, "b1": b1, "w2": w2, "b2": b2, "w3": w3, "b3": b3}


def reference_forward(x, p):
    hp = jax.lax.Precision.HIGHEST
    h = jnp.maximum(jnp.dot(x, p["w1"].T, precision=hp) + p["b1"], 0.0)
    h = jnp.maximum(jnp.dot(h, p["w2"].T, precision=hp) + p["b2"], 0.0)
    return jnp.dot(h, p["w3"].T, precision=hp) + p["b3"]


if __name__ == "__main__":
    key = jax.random.PRNGKey(0)
    kp, kx = jax.random.split(key)

    params = init_params(kp)
    packed = pack_params(params)            # one-time param packing (load time)

    # Small "circle classification" style input: (batch=256, features=2).
    x = jax.random.normal(kx, (256, 2), jnp.float32)
    x_t = jnp.asarray(x.T)                  # features-major contract (2, N)

    fwd = jax.jit(modelo_circulo_2_t)
    out_t = jax.block_until_ready(fwd(x_t, packed))   # (1, 256)
    out = out_t.T                                     # (256, 1)

    ref = reference_forward(x, params)
    assert out.shape == (256, 1)
    assert jnp.allclose(out, ref, atol=1e-5, rtol=1e-5), "mismatch vs reference"

    print("KERNEL_OK")
</pallas_src>

<mosaic_0001>
module attributes {stable_mosaic.version = 11 : i64} {
  func.func @_mlp_kernel(%arg0: i32, %arg1: memref<2x256xf32, #tpu.memory_space<vmem>>, %arg2: memref<11x2xf32, #tpu.memory_space<vmem>>, %arg3: memref<11x1xf32, #tpu.memory_space<vmem>>, %arg4: memref<11x11xf32, #tpu.memory_space<vmem>>, %arg5: memref<8x11xf32, #tpu.memory_space<vmem>>, %arg6: memref<1x256xf32, #tpu.memory_space<vmem>>) attributes {dimension_semantics = [#tpu.dimension_semantics<parallel>], iteration_bounds = array<i64: 1>, scalar_prefetch = 0 : i64, scratch_operands = 0 : i64, tpu.core_type = #tpu.core_type<tc>, window_params = [{transform_indices = @transform_0, window_bounds = array<i64: 2, 256>}, {pipeline_mode = #tpu.pipeline_mode<synchronous>, transform_indices = @transform_1, window_bounds = array<i64: 11, 2>}, {pipeline_mode = #tpu.pipeline_mode<synchronous>, transform_indices = @transform_2, window_bounds = array<i64: 11, 1>}, {pipeline_mode = #tpu.pipeline_mode<synchronous>, transform_indices = @transform_3, window_bounds = array<i64: 11, 11>}, {pipeline_mode = #tpu.pipeline_mode<synchronous>, transform_indices = @transform_4, window_bounds = array<i64: 8, 11>}, {transform_indices = @transform_5, window_bounds = array<i64: 1, 256>}]} {
    %c0 = arith.constant 0 : index
    %c0_0 = arith.constant 0 : index
    %0 = vector.load %arg1[%c0, %c0_0] : memref<2x256xf32, #tpu.memory_space<vmem>>, vector<2x256xf32>
    %c0_1 = arith.constant 0 : index
    %c0_2 = arith.constant 0 : index
    %1 = vector.load %arg2[%c0_1, %c0_2] : memref<11x2xf32, #tpu.memory_space<vmem>>, vector<11x2xf32>
    %cst = arith.constant dense<0.000000e+00> : vector<11x256xf32>
    %2 = tpu.matmul %1, %0, %cst {dimension_numbers = #tpu.dot_dimension_numbers<[1], [0], [0], [1], [0, 0, 1, 1], [], []>, precision = #tpu.contract_precision<fp32>} : vector<11x2xf32>, vector<2x256xf32>, vector<11x256xf32> -> vector<11x256xf32>
    %c0_3 = arith.constant 0 : index
    %c0_4 = arith.constant 0 : index
    %3 = vector.load %arg3[%c0_3, %c0_4] : memref<11x1xf32, #tpu.memory_space<vmem>>, vector<11x1xf32>
    %4 = vector.broadcast %3 : vector<11x1xf32> to vector<11x256xf32>
    %5 = arith.addf %2, %4 : vector<11x256xf32>
    %cst_5 = arith.constant 0.000000e+00 : f32
    %6 = vector.broadcast %cst_5 : f32 to vector<11x256xf32>
    %7 = arith.maximumf %5, %6 : vector<11x256xf32>
    %c0_6 = arith.constant 0 : index
    %c0_7 = arith.constant 0 : index
    %8 = vector.load %arg4[%c0_6, %c0_7] : memref<11x11xf32, #tpu.memory_space<vmem>>, vector<11x11xf32>
    %cst_8 = arith.constant dense<0.000000e+00> : vector<11x256xf32>
    %9 = tpu.matmul %8, %7, %cst_8 {dimension_numbers = #tpu.dot_dimension_numbers<[1], [0], [0], [1], [0, 0, 1, 1], [], []>, precision = #tpu.contract_precision<fp32>} : vector<11x11xf32>, vector<11x256xf32>, vector<11x256xf32> -> vector<11x256xf32>
    %cst_9 = arith.constant 0.000000e+00 : f32
    %10 = vector.broadcast %cst_9 : f32 to vector<11x256xf32>
    %11 = arith.maximumf %9, %10 : vector<11x256xf32>
    %c0_10 = arith.constant 0 : index
    %c0_11 = arith.constant 0 : index
    %12 = vector.load %arg5[%c0_10, %c0_11] : memref<8x11xf32, #tpu.memory_space<vmem>>, vector<8x11xf32>
    %cst_12 = arith.constant dense<0.000000e+00> : vector<8x256xf32>
    %13 = tpu.matmul %12, %11, %cst_12 {dimension_numbers = #tpu.dot_dimension_numbers<[1], [0], [0], [1], [0, 0, 1, 1], [], []>, precision = #tpu.contract_precision<fp32>} : vector<8x11xf32>, vector<11x256xf32>, vector<8x256xf32> -> vector<8x256xf32>
    %14 = vector.extract_strided_slice %13 {offsets = [0, 0], sizes = [1, 256], strides = [1, 1]} : vector<8x256xf32> to vector<1x256xf32>
    %c0_13 = arith.constant 0 : index
    %c0_14 = arith.constant 0 : index
    %15 = vector.load %arg6[%c0_13, %c0_14] : memref<1x256xf32, #tpu.memory_space<vmem>>, vector<1x256xf32>
    tpu.vector_store %arg6[%c0_13, %c0_14], %14 {strides = array<i32>} : memref<1x256xf32, #tpu.memory_space<vmem>>, vector<1x256xf32>,
    return
  }
  func.func @transform_0(%arg0: i32) -> (i32, i32) {
    %c0_i32 = arith.constant 0 : i32
    %c0_i32_0 = arith.constant 0 : i32
    return %c0_i32, %arg0 : i32, i32
  }
  func.func @transform_1(%arg0: i32) -> (i32, i32) {
    %c0_i32 = arith.constant 0 : i32
    %c0_i32_0 = arith.constant 0 : i32
    %c0_i32_1 = arith.constant 0 : i32
    return %c0_i32, %c0_i32_0 : i32, i32
  }
  func.func @transform_2(%arg0: i32) -> (i32, i32) {
    %c0_i32 = arith.constant 0 : i32
    %c0_i32_0 = arith.constant 0 : i32
    %c0_i32_1 = arith.constant 0 : i32
    return %c0_i32, %c0_i32_0 : i32, i32
  }
  func.func @transform_3(%arg0: i32) -> (i32, i32) {
    %c0_i32 = arith.constant 0 : i32
    %c0_i32_0 = arith.constant 0 : i32
    %c0_i32_1 = arith.constant 0 : i32
    return %c0_i32, %c0_i32_0 : i32, i32
  }
  func.func @transform_4(%arg0: i32) -> (i32, i32) {
    %c0_i32 = arith.constant 0 : i32
    %c0_i32_0 = arith.constant 0 : i32
    %c0_i32_1 = arith.constant 0 : i32
    return %c0_i32, %c0_i32_0 : i32, i32
  }
  func.func @transform_5(%arg0: i32) -> (i32, i32) {
    %c0_i32 = arith.constant 0 : i32
    %c0_i32_0 = arith.constant 0 : i32
    return %c0_i32, %arg0 : i32, i32
  }
}

</mosaic_0001>

<bundles_post_ra>
// kernel: modelo_circulo_2_t.1
= control target key start
LH: loop header
LB: loop body
LE: loop exit
PB: predicated region body
PF: predicated region fallthrough
CT: control target
= control target key end

     0   :  { %vm52_vm0 = vcmask 1041408   ;;  %v1701_v3 = vmov 0.0   ;;  %vm45_vm1 = vcmask 15360   ;;  %v1702_v9 = vmov 0   ;;  %s1848_s0 = inlined_call_operand.vmem [shape: f32[2,256], index: 0, kind: input, shape index: {}]   ;;  %s1849_s1 = inlined_call_operand.vmem [shape: f32[11,2], index: 1, kind: input, shape index: {}]   ;;  %s1850_s2 = inlined_call_operand.vmem [shape: f32[11,1], index: 2, kind: input, shape index: {}]   ;;  %s1851_s3 = inlined_call_operand.vmem [shape: f32[11,11], index: 3, kind: input, shape index: {}]   ;;  %s1852_s4 = inlined_call_operand.vmem [shape: f32[8,11], index: 4, kind: input, shape index: {}]   ;;  %s1853_s5 = inlined_call_operand.hbm [shape: f32[1,256], index: 5, kind: output, shape index: {}]  }
   0x1   :  { %v1673_v0 = vld.sshfl [vmem:[%s1848_s0] sm:$0x33 pattern:$0x76325410]  ;;  %123 = vmatprep.mubr.f32.mxu0 %v1701_v3  ;;  %220 = vmatprep.mubr.f32.mxu1 %v1701_v3  ;;  %v23_v5 = vld [vmem:[%s1849_s1 + $0x8] sm:$0x7] }
   0x2   :  { %v44_v1 = vcombine.high %v1673_v0, %v1673_v0  ;;  %v53_v2 = vsel %vm52_vm0, %v1673_v0, 0  ;;  %v22_v4 = vld [vmem:[%s1849_s1] sm:$0xff]  ;;  %v50_v8 = vsel %vm45_vm1, %v23_v5, 0  ;;  %1678 = vset.pattern.permute.xlu0 %v1702_v9  ;;  %v25_v10 = vld [vmem:[%s1850_s2 + $0x8] sm:$0x7] }
   0x3   :  { %v89_v6 = vand.u32 4294901760, %v53_v2  ;;  %v47_v7 = vsel %vm45_vm1, %v22_v4, 0  ;;  %v135_v13 = vand.u32 4294901760, %v50_v8  ;;  %33 = vperm.xlu0 %1678, %v25_v10  }
   0x4   :  { %v55_v11 = vsel %vm52_vm0, %v44_v1, 0  ;;  %v124_v12 = vand.u32 4294901760, %v47_v7 }
   0x5   :  { %10 = vsyncpa [#allocation3], 0  ;;  %v87_v14 = vand.u32 4294901760, %v55_v11  ;;  %v183_v15 = vsub.f32 %v53_v2, %v89_v6  ;;  %v24_v16 = vld [vmem:[%s1850_s2] sm:$0xff]  ;;  %v136_v18 = vsub.f32 %v50_v8, %v135_v13  ;;  %vm577_vm2 = vcmask 89088  }
   0x6   :  { %v125_v17 = vsub.f32 %v47_v7, %v124_v12  ;;  %v575_v44 = vld [vmem:[%s1851_s3] sm:$0xff]  ;;  %v576_v56 = vld [vmem:[%s1851_s3 + $0x8] sm:$0x7]  ;;  %vm584_vm3 = vcmask 1042432  }
   0x7   :  { %88 = vmatprep.subr.mxu0 %v87_v14  ;;  %v177_v19 = vsub.f32 %v55_v11, %v87_v14  ;;  %v184_v20 = vand.u32 4294901760, %v183_v15  ;;  %v137_v22 = vand.u32 4294901760, %v136_v18  ;;  %28 = vperm.xlu0 %1678, %v24_v16   ;;  %v579_v51 = vsel %vm577_vm2, %v575_v44, 0 }
   0x8   :  { %90 = vmatpush1.msra.mxu0 %v89_v6  ;;  %v126_v21 = vand.u32 4294901760, %v125_v17  ;;  %v1771_v58 = vand.u32 4294901760, %v579_v51  ;;  %v582_v1 = vsel %vm577_vm2, %v576_v56, 0 }
   0x9   :  { %v178_v23 = vand.u32 4294901760, %v177_v19  ;;  %v185_v24 = vsub.f32 %v183_v15, %v184_v20  ;;  %267 = vmatprep.subr.mxu0 %v177_v19  ;;  %v138_v26 = vsub.f32 %v136_v18, %v137_v22  ;;  %v1777_v16 = vand.u32 4294901760, %v582_v1 }
   0xa   :  { %v127_v25 = vsub.f32 %v125_v17, %v126_v21  ;;  %v1775_v9 = vsub.f32 %v579_v51, %v1771_v58 }
   0xb   :  { %v179_v27 = vsub.f32 %v177_v19, %v178_v23  ;;  %v186_v29 = vand.u32 4294901760, %v185_v24  ;;  %v139_v31 = vand.u32 4294901760, %v138_v26 }
   0xc   :  { %v128_v28 = vand.u32 4294901760, %v127_v25  ;;  %v662_v26 = vand.u32 4294901760, %v1775_v9 }
   0xd   :  { %v180_v30 = vand.u32 4294901760, %v179_v27 }
   0xe   :  { %129 = vmatmul.mubr.f32.vlgmr.msra.gmra.mxu0 %v128_v28  ;;  %v1781_v28 = vsub.f32 %v582_v1, %v1777_v16 }
   0xf   :  { %181 = vmatprep.subr.mxu1 %v180_v30  ;;  %134 = vmatprep.mubr.f32.mxu0 %v1701_v3 }
  0x10   :  { %187 = vmatpush1.msra.mxu1 %v186_v29  ;;  %270 = vmatpush1.msra.mxu0 %v183_v15 }
  0x11   :  { %222 = vmatmul.mubr.f32.vlgmr.msra.gmra.mxu1 %v124_v12  ;;  %351 = vmatprep.subr.mxu1 %v87_v14 }
  0x12   :  { %140 = vmatmul.mubr.f32.gmra.mxu0 %v139_v31  ;;  %227 = vmatprep.mubr.f32.mxu1 %v1701_v3 }
  0x13   :  { %303 = vmatprep.mubr.f32.mxu0 %v1701_v3  ;;  %353 = vmatpush1.msra.mxu1 %v89_v6 }
  0x14   :  { %438 = vmatprep.subr.mxu0 %v178_v23  ;;  %521 = vmatprep.subr.mxu1 %v87_v14 }
  0x15   :  { %229 = vmatmul.mubr.f32.gmra.mxu1 %v135_v13 }
  0x16   :  { %306 = vmatmul.mubr.f32.vlgmr.msra.gmra.mxu0 %v125_v17  ;;  %386 = vmatprep.mubr.f32.mxu1 %v1701_v3 }
  0x17   :  { %311 = vmatprep.mubr.f32.mxu0 %v1701_v3  ;;  %442 = vmatpush1.msra.mxu0 %v184_v20 }
  0x19   :  { %390 = vmatmul.mubr.f32.vlgmr.msra.gmra.mxu1 %v126_v21 }
  0x1a   :  { %314 = vmatmul.mubr.f32.gmra.mxu0 %v136_v18  ;;  %395 = vmatprep.mubr.f32.mxu1 %v1701_v3 }
  0x1b   :  { %475 = vmatprep.mubr.f32.mxu0 %v1701_v3  ;;  %523 = vmatpush1.msra.mxu1 %v89_v6 }
  0x1d   :  { %399 = vmatmul.mubr.f32.gmra.mxu1 %v137_v22 }
  0x1e   :  { %477 = vmatmul.mubr.f32.vlgmr.msra.gmra.mxu0 %v124_v12  ;;  %556 = vmatprep.mubr.f32.mxu1 %v1701_v3 }
  0x1f   :  { %482 = vmatprep.mubr.f32.mxu0 %v1701_v3 }
  0x21   :  { %558 = vmatmul.mubr.f32.vlgmr.msra.gmra.mxu1 %v124_v12 }
  0x22   :  { %484 = vmatmul.mubr.f32.gmra.mxu0 %v135_v13  ;;  %563 = vmatprep.mubr.f32.mxu1 %v1701_v3 }
  0x23   :  { %659 = vmatprep.mubr.f32.mxu0 %v1701_v3 }
  0x25   :  { %565 = vmatmul.mubr.f32.gmra.mxu1 %v135_v13 }
  0x26   :  { %766 = vmatprep.mubr.f32.mxu1 %v1701_v3 }
  0x7e   :  { %v34_v32 = vpop.permute.xlu0 %33 }
  0x82   :  { %v29_v37 = vpop.permute.xlu0 %28 }
  0xce   :  { %v130_v33 = vpop.f32.mrf.mxu0 }
  0xcf   :  { %v131_v41 = vadd.f32 %v130_v33, %v29_v37 }
  0xd0   :  { %v132_v34 = vpop.f32.mrf.mxu0 }
  0xd1   :  { %v223_v35 = vpop.f32.mrf.mxu1  ;;  %v133_v47 = vadd.f32 %v132_v34, %v29_v37 }
  0xd2   :  { %v141_v36 = vpop.f32.mrf.mxu0  ;;  %v224_v49 = vadd.f32 %v223_v35, %v131_v41  ;;  %v663_v35 = vsub.f32 %v1775_v9, %v662_v26 }
  0xd3   :  { %v225_v38 = vpop.f32.mrf.mxu1  ;;  %v142_v48 = vadd.f32 %v141_v36, %v34_v32 }
  0xd4   :  { %v143_v39 = vpop.f32.mrf.mxu0  ;;  %v226_v53 = vadd.f32 %v225_v38, %v133_v47  ;;  %v673_v38 = vand.u32 4294901760, %v1781_v28 }
  0xd5   :  { %v230_v40 = vpop.f32.mrf.mxu1  ;;  %v144_v59 = vadd.f32 %v143_v39, %v34_v32 }
  0xd6   :  { %v307_v42 = vpop.f32.mrf.mxu0  ;;  %v231_v60 = vadd.f32 %v230_v40, %v142_v48 }
  0xd7   :  { %v232_v43 = vpop.f32.mrf.mxu1  ;;  %v308_v54 = vadd.f32 %v307_v42, %v224_v49 }
  0xd8   :  { %v309_v45 = vpop.f32.mrf.mxu0  ;;  %v233_v2 = vadd.f32 %v232_v43, %v144_v59  ;;  %v664_v43 = vand.u32 4294901760, %v663_v35 }
  0xd9   :  { %v391_v46 = vpop.f32.mrf.mxu1  ;;  %v310_v61 = vadd.f32 %v309_v45, %v226_v53 }
  0xda   :  { %v315_v50 = vpop.f32.mrf.mxu0  ;;  %v392_v62 = vadd.f32 %v391_v46, %v308_v54  ;;  %v674_v46 = vsub.f32 %v1781_v28, %v673_v38 }
  0xdb   :  { %v393_v52 = vpop.f32.mrf.mxu1  ;;  %v316_v4 = vadd.f32 %v315_v50, %v231_v60 }
  0xdc   :  { %v317_v55 = vpop.f32.mrf.mxu0  ;;  %v394_v5 = vadd.f32 %v393_v52, %v310_v61  ;;  %v675_v51 = vand.u32 4294901760, %v674_v46 }
  0xdd   :  { %v400_v57 = vpop.f32.mrf.mxu1  ;;  %v318_v10 = vadd.f32 %v317_v55, %v233_v2 }
  0xde   :  { %v478_v63 = vpop.f32.mrf.mxu0  ;;  %v401_v11 = vadd.f32 %v400_v57, %v316_v4 }
  0xdf   :  { %v402_v0 = vpop.f32.mrf.mxu1  ;;  %v479_v6 = vadd.f32 %v478_v63, %v392_v62 }
  0xe0   :  { %v480_v7 = vpop.f32.mrf.mxu0  ;;  %v403_v17 = vadd.f32 %v402_v0, %v318_v10 }
  0xe1   :  { %v559_v8 = vpop.f32.mrf.mxu1  ;;  %v481_v12 = vadd.f32 %v480_v7, %v394_v5 }
  0xe2   :  { %v485_v13 = vpop.f32.mrf.mxu0  ;;  %v560_v14 = vadd.f32 %v559_v8, %v479_v6 }
  0xe3   :  { %v561_v15 = vpop.f32.mrf.mxu1  ;;  %v486_v18 = vadd.f32 %v485_v13, %v401_v11  ;;  %v1135_v11 = vld [vmem:[%s1852_s4] sm:$0xff]  ;;  %s1704_s4 = smov [#allocation2]  }
  0xe4   :  { %v571_v19 = vmax.f32 %v560_v14, 0.0  ;;  %v487_v20 = vpop.f32.mrf.mxu0  ;;  %v562_v21 = vadd.f32 %v561_v15, %v481_v12  ;;  %s1665_s30 = sshll.u32 %s1704_s4, 4  ;;  %s1666_s30 = int_to_ptr.vmem [resolvable:$true] %s1665_s30 }
  0xe5   :  { %v566_v22 = vpop.f32.mrf.mxu1  ;;  %v488_v23 = vadd.f32 %v487_v20, %v403_v17  ;;  %s1679_s6 = scalar_lea.vmem %s1666_s30, 32  ;;  %p1684_p1 = scmp.lt.s32.totalorder %s1666_s30, %s1666_s30 }
  0xe6   :  { %v572_v24 = vmax.f32 %v562_v21, 0.0  ;;  %v567_v25 = vadd.f32 %v566_v22, %v486_v18  ;;  %v1783_v29 = vand.u32 4294901760, %v571_v19  ;;  %p1680_p0 = scmp.ne.s32.totalorder %s1666_s30, %s1679_s6  ;;  %p1685_p2 = scmp.lt.s32.totalorder %s1679_s6, %s1679_s6 }
  0xe7   :  { %v568_v27 = vpop.f32.mrf.mxu1 }
  0xe8   :  { %v1785_v30 = vand.u32 4294901760, %v572_v24  ;;  %v573_v31 = vmax.f32 %v567_v25, 0.0  ;;  %v569_v32 = vadd.f32 %v568_v27, %v488_v23  ;;  %v729_v39 = vsub.f32 %v571_v19, %v1783_v29  ;;  %p1686_p3 = por %p1685_p2, %p1684_p1 }
  0xe9   :  { %v1137_v19 = vsel %vm577_vm2, %v1135_v11, 0 }
  0xea   :  { %v586_v33 = vsel %vm584_vm3, %v573_v31, 0  ;;  %v574_v34 = vmax.f32 %v569_v32, 0.0  ;;  %v723_v36 = vsub.f32 %v572_v24, %v1785_v30  ;;  %v730_v48 = vand.u32 4294901760, %v729_v39  ;;  %p1687_p4 = pnand %p1686_p3, %p1680_p0 }
  0xeb   :  { %v621_v37 = vand.u32 4294901760, %v586_v33 }
  0xec   :  { %v589_v40 = vsel %vm584_vm3, %v574_v34, 0  ;;  %v724_v47 = vand.u32 4294901760, %v723_v36  ;;  %v731_v54 = vsub.f32 %v729_v39, %v730_v48 }
  0xed   :  { %v717_v41 = vsub.f32 %v586_v33, %v621_v37  ;;  %v619_v42 = vand.u32 4294901760, %v589_v40 }
  0xee   :  { %v725_v53 = vsub.f32 %v723_v36, %v724_v47  ;;  %v732_v59 = vand.u32 4294901760, %v731_v54 }
  0xef   :  { %v718_v44 = vand.u32 4294901760, %v717_v41  ;;  %620 = vmatprep.subr.mxu0 %v619_v42  ;;  %v711_v45 = vsub.f32 %v589_v40, %v619_v42 }
  0xf0   :  { %622 = vmatpush1.msra.mxu0 %v621_v37  ;;  %v726_v57 = vand.u32 4294901760, %v725_v53 }
  0xf1   :  { %624 = vmatprep.subr.mxu0 %v1785_v30  ;;  %v712_v49 = vand.u32 4294901760, %v711_v45  ;;  %v719_v50 = vsub.f32 %v717_v41, %v718_v44 }
  0xf2   :  { %626 = vmatpush1.msra.mxu0 %v1783_v29 }
  0xf3   :  { %665 = vmatmul.mubr.f32.vlgmr.msra.gmra.mxu0 %v664_v43  ;;  %811 = vmatprep.subr.mxu0 %v711_v45  ;;  %v713_v52 = vsub.f32 %v711_v45, %v712_v49  ;;  %v720_v56 = vand.u32 4294901760, %v719_v50 }
  0xf4   :  { %814 = vmatpush1.msra.mxu0 %v717_v41  ;;  %670 = vmatprep.mubr.f32.mxu0 %v1701_v3 }
  0xf5   :  { %817 = vmatprep.subr.mxu0 %v723_v36  ;;  %v714_v55 = vand.u32 4294901760, %v713_v52 }
  0xf6   :  { %820 = vmatpush1.msra.mxu0 %v729_v39 }
  0xf7   :  { %676 = vmatmul.mubr.f32.gmra.mxu0 %v675_v51  ;;  %715 = vmatprep.subr.mxu1 %v714_v55 }
  0xf8   :  { %988 = vmatprep.subr.mxu0 %v712_v49  ;;  %721 = vmatpush1.msra.mxu1 %v720_v56 }
  0xf9   :  { %727 = vmatprep.subr.mxu1 %v726_v57  ;;  %853 = vmatprep.mubr.f32.mxu0 %v1701_v3 }
  0xfa   :  { %733 = vmatpush1.msra.mxu1 %v732_v59 }
  0xfb   :  { %768 = vmatmul.mubr.f32.vlgmr.msra.gmra.mxu1 %v1771_v58  ;;  %856 = vmatmul.mubr.f32.vlgmr.msra.gmra.mxu0 %v1775_v9 }
  0xfc   :  { %899 = vmatprep.subr.mxu1 %v619_v42  ;;  %992 = vmatpush1.msra.mxu0 %v718_v44 }
  0xfd   :  { %901 = vmatpush1.msra.mxu1 %v621_v37  ;;  %996 = vmatprep.subr.mxu0 %v724_v47 }
  0xfe   :  { %903 = vmatprep.subr.mxu1 %v1785_v30  ;;  %1000 = vmatpush1.msra.mxu0 %v730_v48 }
  0xff   :  { %773 = vmatprep.mubr.f32.mxu1 %v1701_v3  ;;  %905 = vmatpush1.msra.mxu1 %v1783_v29 }
 0x100   :  { %775 = vmatmul.mubr.f32.gmra.mxu1 %v1777_v16  ;;  %1077 = vmatprep.subr.mxu1 %v619_v42 }
 0x101   :  { %861 = vmatprep.mubr.f32.mxu0 %v1701_v3  ;;  %938 = vmatprep.mubr.f32.mxu1 %v1701_v3 }
 0x102   :  { %864 = vmatmul.mubr.f32.gmra.mxu0 %v1781_v28 }
 0x103   :  { %1033 = vmatprep.mubr.f32.mxu0 %v1701_v3 }
 0x104   :  { %942 = vmatmul.mubr.f32.vlgmr.msra.gmra.mxu1 %v662_v26  ;;  %v1828_v26 = vand.u32 4294901760, %v1137_v19 }
 0x105   :  { %1079 = vmatpush1.msra.mxu1 %v621_v37  ;;  %947 = vmatprep.mubr.f32.mxu1 %v1701_v3 }
 0x106   :  { %1081 = vmatprep.subr.mxu1 %v1785_v30  ;;  %1035 = vmatmul.mubr.f32.vlgmr.msra.gmra.mxu0 %v1771_v58  ;;  %v1831_v36 = vsub.f32 %v1137_v19, %v1828_v26  ;;  %v1703_v19 = vmov 1966171168  }
 0x107   :  { %1083 = vmatpush1.msra.mxu1 %v1783_v29  ;;  %1040 = vmatprep.mubr.f32.mxu0 %v1701_v3 }
 0x108   :  { %951 = vmatmul.mubr.f32.gmra.mxu1 %v673_v38  ;;  %v1216_v45 = vand.u32 4294901760, %v1831_v36 }
 0x109   :  { %1116 = vmatprep.mubr.f32.mxu1 %v1701_v3 }
 0x10a   :  { %1042 = vmatmul.mubr.f32.gmra.mxu0 %v1777_v16  ;;  %v1217_v54 = vsub.f32 %v1831_v36, %v1216_v45 }
 0x10b   :  { %1213 = vmatprep.mubr.f32.mxu0 %v1701_v3 }
 0x10c   :  { %1118 = vmatmul.mubr.f32.vlgmr.msra.gmra.mxu1 %v1771_v58 }
 0x10d   :  { %1123 = vmatprep.mubr.f32.mxu1 %v1701_v3 }
 0x110   :  { %1125 = vmatmul.mubr.f32.gmra.mxu1 %v1777_v16 }
 0x111   :  { %1309 = vmatprep.mubr.f32.mxu1 %v1701_v3 }
 0x1b3   :  { %v666_v60 = vpop.f32.mrf.mxu0 }
 0x1b5   :  { %v668_v61 = vpop.f32.mrf.mxu0 }
 0x1b7   :  { %v677_v62 = vpop.f32.mrf.mxu0 }
 0x1b9   :  { %v679_v63 = vpop.f32.mrf.mxu0 }
 0x1bb   :  { %v769_v0 = vpop.f32.mrf.mxu1  ;;  %v857_v1 = vpop.f32.mrf.mxu0 }
 0x1bc   :  { %v770_v6 = vadd.f32 %v769_v0, %v666_v60 }
 0x1bd   :  { %v771_v2 = vpop.f32.mrf.mxu1  ;;  %v859_v4 = vpop.f32.mrf.mxu0 }
 0x1be   :  { %v772_v9 = vadd.f32 %v771_v2, %v668_v61  ;;  %v858_v12 = vadd.f32 %v857_v1, %v770_v6 }
 0x1c0   :  { %v776_v5 = vpop.f32.mrf.mxu1  ;;  %v860_v16 = vadd.f32 %v859_v4, %v772_v9 }
 0x1c1   :  { %v777_v13 = vadd.f32 %v776_v5, %v677_v62  ;;  %v1218_v62 = vand.u32 4294901760, %v1217_v54 }
 0x1c2   :  { %v778_v7 = vpop.f32.mrf.mxu1  ;;  %v865_v8 = vpop.f32.mrf.mxu0 }
 0x1c3   :  { %v779_v17 = vadd.f32 %v778_v7, %v679_v63  ;;  %v866_v22 = vadd.f32 %v865_v8, %v777_v13 }
 0x1c4   :  { %v867_v58 = vpop.f32.mrf.mxu0  ;;  %v943_v10 = vpop.f32.mrf.mxu1 }
 0x1c5   :  { %v944_v18 = vadd.f32 %v943_v10, %v858_v12  ;;  %v868_v27 = vadd.f32 %v867_v58, %v779_v17 }
 0x1c6   :  { %v945_v14 = vpop.f32.mrf.mxu1  ;;  %v1036_v15 = vpop.f32.mrf.mxu0 }
 0x1c7   :  { %v946_v23 = vadd.f32 %v945_v14, %v860_v16  ;;  %v1037_v28 = vadd.f32 %v1036_v15, %v944_v18 }
 0x1c8   :  { %v952_v20 = vpop.f32.mrf.mxu1  ;;  %v1038_v21 = vpop.f32.mrf.mxu0 }
 0x1c9   :  { %v953_v29 = vadd.f32 %v952_v20, %v866_v22  ;;  %v1039_v31 = vadd.f32 %v1038_v21, %v946_v23  ;;  %v1640_v20 = vunpack.c.l.s4 %v1703_v19  ;;  %v1642_v21 = vlaneseq }
 0x1ca   :  { %v954_v24 = vpop.f32.mrf.mxu1  ;;  %v1043_v25 = vpop.f32.mrf.mxu0 }
 0x1cb   :  { %v955_v32 = vadd.f32 %v954_v24, %v868_v27  ;;  %v1044_v37 = vadd.f32 %v1043_v25, %v953_v29  ;;  %v1643_v29 = vshrl.u32 %v1642_v21, 7  ;;  %vm1656_vm4 = vcmp.lt.s32.totalorder %v1642_v21, 256 }
 0x1cc   :  { %v1119_v30 = vpop.f32.mrf.mxu1  ;;  %v1045_v34 = vpop.f32.mrf.mxu0 }
 0x1cd   :  { %v1120_v33 = vadd.f32 %v1119_v30, %v1037_v28  ;;  %v1046_v41 = vadd.f32 %v1045_v34, %v955_v32 }
 0x1ce   :  { %v1121_v35 = vpop.f32.mrf.mxu1 }
 0x1cf   :  { %v1131_v38 = vmax.f32 %v1120_v33, 0.0  ;;  %v1122_v39 = vadd.f32 %v1121_v35, %v1039_v31 }
 0x1d0   :  { %v1126_v40 = vpop.f32.mrf.mxu1 }
 0x1d1   :  { %v1132_v42 = vmax.f32 %v1122_v39, 0.0  ;;  %v1127_v43 = vadd.f32 %v1126_v40, %v1044_v37  ;;  %v1179_v46 = vand.u32 4294901760, %v1131_v38 }
 0x1d2   :  { %v1128_v44 = vpop.f32.mrf.mxu1 }
 0x1d3   :  { %v1177_v47 = vand.u32 4294901760, %v1132_v42  ;;  %v1133_v48 = vmax.f32 %v1127_v43, 0.0  ;;  %v1129_v49 = vadd.f32 %v1128_v44, %v1046_v41  ;;  %v1272_v55 = vsub.f32 %v1131_v38, %v1179_v46 }
 0x1d5   :  { %v1140_v50 = vsel %vm584_vm3, %v1133_v48, 0  ;;  %v1134_v51 = vmax.f32 %v1129_v49, 0.0  ;;  %v1266_v52 = vsub.f32 %v1132_v42, %v1177_v47  ;;  %v1273_v0 = vand.u32 4294901760, %v1272_v55 }
 0x1d6   :  { %v1175_v53 = vand.u32 4294901760, %v1140_v50 }
 0x1d7   :  { %v1143_v56 = vsel %vm584_vm3, %v1134_v51, 0  ;;  %v1267_v63 = vand.u32 4294901760, %v1266_v52  ;;  %v1274_v6 = vsub.f32 %v1272_v55, %v1273_v0 }
 0x1d8   :  { %v1260_v57 = vsub.f32 %v1140_v50, %v1175_v53  ;;  %v1173_v59 = vand.u32 4294901760, %v1143_v56 }
 0x1d9   :  { %v1268_v5 = vsub.f32 %v1266_v52, %v1267_v63  ;;  %v1275_v58 = vand.u32 4294901760, %v1274_v6 }
 0x1da   :  { %v1261_v60 = vand.u32 4294901760, %v1260_v57  ;;  %1174 = vmatprep.subr.mxu0 %v1173_v59  ;;  %v1254_v61 = vsub.f32 %v1143_v56, %v1173_v59 }
 0x1db   :  { %1176 = vmatpush1.msra.mxu0 %v1175_v53  ;;  %v1269_v9 = vand.u32 4294901760, %v1268_v5 }
 0x1dc   :  { %1178 = vmatprep.subr.mxu0 %v1177_v47  ;;  %v1255_v1 = vand.u32 4294901760, %v1254_v61  ;;  %v1262_v2 = vsub.f32 %v1260_v57, %v1261_v60 }
 0x1dd   :  { %1180 = vmatpush1.msra.mxu0 %v1179_v46 }
 0x1de   :  { %1347 = vmatprep.subr.mxu0 %v1254_v61  ;;  %1219 = vmatmul.mubr.f32.vlgmr.msra.gmra.mxu0 %v1218_v62  ;;  %v1256_v4 = vsub.f32 %v1254_v61, %v1255_v1  ;;  %v1263_v8 = vand.u32 4294901760, %v1262_v2 }
 0x1df   :  { %1350 = vmatpush1.msra.mxu0 %v1260_v57  ;;  %1389 = vmatprep.mubr.f32.mxu0 %v1701_v3 }
 0x1e0   :  { %1353 = vmatprep.subr.mxu0 %v1266_v52  ;;  %v1257_v7 = vand.u32 4294901760, %v1256_v4 }
 0x1e1   :  { %1356 = vmatpush1.msra.mxu0 %v1272_v55 }
 0x1e2   :  { %1258 = vmatprep.subr.mxu1 %v1257_v7  ;;  %1507 = vmatprep.subr.mxu0 %v1255_v1 }
 0x1e3   :  { %1264 = vmatpush1.msra.mxu1 %v1263_v8  ;;  %1392 = vmatmul.mubr.f32.vlgmr.msra.gmra.mxu0 %v1831_v36 }
 0x1e4   :  { %1511 = vmatpush1.msra.mxu0 %v1261_v60  ;;  %1270 = vmatprep.subr.mxu1 %v1269_v9 }
 0x1e5   :  { %1515 = vmatprep.subr.mxu0 %v1267_v63  ;;  %1276 = vmatpush1.msra.mxu1 %v1275_v58 }
 0x1e6   :  { %1519 = vmatpush1.msra.mxu0 %v1273_v0  ;;  %1427 = vmatprep.subr.mxu1 %v1173_v59 }
 0x1e7   :  { %1311 = vmatmul.mubr.f32.vlgmr.msra.gmra.mxu1 %v1828_v26  ;;  %1552 = vmatprep.mubr.f32.mxu0 %v1701_v3 }
 0x1e8   :  { %1429 = vmatpush1.msra.mxu1 %v1175_v53  ;;  %1466 = vmatprep.mubr.f32.mxu1 %v1701_v3 }
 0x1e9   :  { %1431 = vmatprep.subr.mxu1 %v1177_v47  ;;  %1554 = vmatmul.mubr.f32.vlgmr.msra.gmra.mxu0 %v1828_v26 }
 0x1ea   :  { %1433 = vmatpush1.msra.mxu1 %v1179_v46 }
 0x1eb   :  { %1589 = vmatprep.subr.mxu1 %v1173_v59  ;;  %1470 = vmatmul.mubr.f32.vlgmr.msra.gmra.mxu1 %v1216_v45 }
 0x1ec   :  { %1591 = vmatpush1.msra.mxu1 %v1175_v53  ;;  %1628 = vmatprep.mubr.f32.mxu1 %v1701_v3 }
 0x1ed   :  { %1593 = vmatprep.subr.mxu1 %v1177_v47 }
 0x1ee   :  { %1595 = vmatpush1.msra.mxu1 %v1179_v46 }
 0x1ef   :  { %1630 = vmatmul.mubr.f32.vlgmr.msra.gmra.mxu1 %v1828_v26  ;;  %v1641_v26 = vunpack.c.0.s8 %v1640_v20 }
 0x1f1   :  { %v1644_v36 = vsub.s32 %v1641_v26, %v1643_v29 }
 0x29e   :  { %v1220_v10 = vpop.f32.mrf.mxu0 }
 0x2a0   :  { %v1222_v11 = vpop.f32.mrf.mxu0 }
 0x2a3   :  { %v1393_v12 = vpop.f32.mrf.mxu0 }
 0x2a5   :  { %v1395_v14 = vpop.f32.mrf.mxu0 }
 0x2a7   :  { %v1312_v13 = vpop.f32.mrf.mxu1 }
 0x2a8   :  { %v1313_v15 = vadd.f32 %v1312_v13, %v1220_v10 }
 0x2a9   :  { %v1314_v16 = vpop.f32.mrf.mxu1  ;;  %v1555_v23 = vpop.f32.mrf.mxu0 }
 0x2aa   :  { %v1315_v17 = vadd.f32 %v1314_v16, %v1222_v11  ;;  %v1394_v18 = vadd.f32 %v1393_v12, %v1313_v15 }
 0x2ab   :  { %v1471_v22 = vpop.f32.mrf.mxu1  ;;  %v1557_v30 = vpop.f32.mrf.mxu0 }
 0x2ac   :  { %v1396_v24 = vadd.f32 %v1395_v14, %v1315_v17  ;;  %v1472_v3 = vadd.f32 %v1471_v22, %v1394_v18 }
 0x2ad   :  { %v1473_v25 = vpop.f32.mrf.mxu1 }
 0x2ae   :  { %v1474_v27 = vadd.f32 %v1473_v25, %v1396_v24  ;;  %v1556_v28 = vadd.f32 %v1555_v23, %v1472_v3 }
 0x2af   :  { %v1631_v31 = vpop.f32.mrf.mxu1 }
 0x2b0   :  { %v1558_v32 = vadd.f32 %v1557_v30, %v1474_v27  ;;  %v1632_v34 = vadd.f32 %v1631_v31, %v1556_v28 }
 0x2b1   :  { %v1633_v33 = vpop.f32.mrf.mxu1 }
 0x2b2   :  { %v1634_v35 = vadd.f32 %v1633_v33, %v1558_v32 }
 0x2b4   :  { %v1638_v37 = vcombine.low %v1632_v34, %v1634_v35 }
 0x2b6   :  { %v1645_v38 = vrot.slane %v1638_v37, %v1644_v36 }
 0x2b8   :  { %v1652_v39 = vrot.slane %v1645_v38, %v1644_v36 }
 0x2ba   :  { %1658 = vst.msk [vmem:[#allocation2] sm:$0x3] %vm1656_vm4, %v1652_v39 }
 0x2bb   :  { %1690 = shalt.err (!%p1687_p4)
}
 0x2bc   :  { %1668 = dma.vmem_to_hbm [thread:$0]  %s1666_s30, 32, %s1853_s5, [#allocation3]  }
 0x2bd   :  { %1699 = dma.done.wait [#allocation3], 32  }
 0x2be   :  { %1700 = vsyncadd [#allocation3], 4294967264 }
 0x2bf   :  { %1672 = vsyncpa [#allocation3], 1 }

</bundles_post_ra>
